<compile_context>
chip_gen: v7x
topology: tpu7x:2x2x1
jax: 0.10.0
libtpu: 0.0.40
codegen_flags: <defaults>
</compile_context>

<pallas_src>
import jax
import jax.numpy as jnp
from jax import lax
from jax.experimental import pallas as pl
from jax.experimental.pallas import tpu as pltpu

CONV_K, CONV_S, CONV_P = 3, 1, 1     # ResStemCifar conv: 3x3, stride 1, pad 1, no bias
BN_EPS = 1e-5                        # cfg.BN.EPS


def _round_up(x, m):
    return (x + m - 1) // m * m


def _conv_bn_relu_kernel(p_ref, w_ref, scale_ref, shift_ref, o_ref):
    # p_ref:     (1, TM, K)      bf16  im2col patches, K = 9*Cin (lane dim)
    # w_ref:     (K, Coutp)      bf16  conv taps, Coutp % 128 == 0
    # scale_ref: (1, Coutp)      f32   folded BatchNorm scale
    # shift_ref: (1, Coutp)      f32   folded BatchNorm shift
    # o_ref:     (1, TM, Coutp)  f32
    acc = jnp.dot(p_ref[0], w_ref[...], preferred_element_type=jnp.float32)
    y = acc * scale_ref[...] + shift_ref[...]          # eval-mode BN affine
    o_ref[0] = jnp.maximum(y, 0.0).astype(o_ref.dtype)  # ReLU


def res_stem_cifar(x_nchw, weight, gamma, beta, running_mean, running_var,
                   eps=BN_EPS, stride=CONV_S, block_m=256):
    """ResStemCifar forward.  x: (N, Cin, H, W) f32 -> (N, Cout, Ho, Wo) f32."""
    # TODO(synk): BatchNorm is implemented in eval mode (running stats folded to
    # scale/shift); training-mode batch-statistics reduction is not implemented.
    N, Cin, H, W = x_nchw.shape
    Cout = weight.shape[0]
    Ho = (H + 2 * CONV_P - CONV_K) // stride + 1
    Wo = (W + 2 * CONV_P - CONV_K) // stride + 1
    K = CONV_K * CONV_K * Cin

    # ---- im2col on the (small) input so the kernel is a single large-K matmul.
    x = jnp.transpose(x_nchw, (0, 2, 3, 1))                          # NHWC
    xp = jnp.pad(x, ((0, 0), (CONV_P, CONV_P), (CONV_P, CONV_P), (0, 0)))
    taps = [xp[:, dh:dh + stride * (Ho - 1) + 1:stride,
               dw:dw + stride * (Wo - 1) + 1:stride, :]
            for dh in range(CONV_K) for dw in range(CONV_K)]         # (N, Ho, Wo, Cin)
    patches = jnp.concatenate(taps, axis=-1)                         # (N, Ho, Wo, K)
    M = Ho * Wo
    patches = patches.reshape(N, M, K).astype(jnp.bfloat16)          # bf16 MXU inputs

    # Row-band tiling over the flattened spatial axis.
    TM = min(block_m, _round_up(M, 8))                               # multiple of 8
    Mp = _round_up(M, TM)
    if Mp != M:
        patches = jnp.pad(patches, ((0, 0), (0, Mp - M), (0, 0)))

    # Weights: (Cout, Cin, 3, 3) -> (kh, kw, cin, cout) -> (K, Coutp) bf16,
    # Cout zero-padded to a lane-dense multiple of 128.
    Coutp = _round_up(Cout, 128)
    w2 = jnp.transpose(weight, (2, 3, 1, 0)).reshape(K, Cout).astype(jnp.bfloat16)
    w2 = jnp.pad(w2, ((0, 0), (0, Coutp - Cout)))

    scale = (gamma / jnp.sqrt(running_var + eps)).astype(jnp.float32)
    shift = (beta - running_mean * scale).astype(jnp.float32)
    scale2 = jnp.pad(scale.reshape(1, Cout), ((0, 0), (0, Coutp - Cout)))
    shift2 = jnp.pad(shift.reshape(1, Cout), ((0, 0), (0, Coutp - Cout)))

    out = pl.pallas_call(
        _conv_bn_relu_kernel,
        out_shape=jax.ShapeDtypeStruct((N, Mp, Coutp), jnp.float32),
        grid_spec=pltpu.PrefetchScalarGridSpec(
            num_scalar_prefetch=0,
            grid=(N, Mp // TM),
            in_specs=[
                pl.BlockSpec((1, TM, K), lambda n, m: (n, m, 0)),
                pl.BlockSpec((K, Coutp), lambda n, m: (0, 0)),
                pl.BlockSpec((1, Coutp), lambda n, m: (0, 0)),
                pl.BlockSpec((1, Coutp), lambda n, m: (0, 0)),
            ],
            out_specs=pl.BlockSpec((1, TM, Coutp), lambda n, m: (n, m, 0)),
        ),
        compiler_params=pltpu.CompilerParams(
            dimension_semantics=("parallel", "parallel"),
            vmem_limit_bytes=48 * 1024 * 1024,   # headroom under v7x 64 MiB physical
        ),
    )(patches, w2, scale2, shift2)

    out = out[:, :M, :Cout].reshape(N, Ho, Wo, Cout)
    return jnp.transpose(out, (0, 3, 1, 2))                          # back to NCHW


def _reference(x_nchw, weight, gamma, beta, running_mean, running_var,
               eps=BN_EPS, stride=CONV_S):
    """Pure-JAX reference (XLA conv) for correctness checking."""
    x = jnp.transpose(x_nchw, (0, 2, 3, 1)).astype(jnp.float32)
    w = jnp.transpose(weight, (2, 3, 1, 0)).astype(jnp.float32)
    y = lax.conv_general_dilated(x, w, (stride, stride),
                                 ((CONV_P, CONV_P), (CONV_P, CONV_P)),
                                 dimension_numbers=("NHWC", "HWIO", "NHWC"),
                                 preferred_element_type=jnp.float32)
    scale = gamma / jnp.sqrt(running_var + eps)
    shift = beta - running_mean * scale
    y = jnp.maximum(y * scale + shift, 0.0)
    return jnp.transpose(y, (0, 3, 1, 2))


if __name__ == "__main__":
    key = jax.random.PRNGKey(0)
    kx, kw, kg, kb, km, kv = jax.random.split(key, 6)

    N, w_in, H, W = 2, 3, 32, 32     # CIFAR-stem-like shapes
    w_out = 16

    x = jax.random.normal(kx, (N, w_in, H, W), jnp.float32)
    weight = jax.random.normal(kw, (w_out, w_in, CONV_K, CONV_K), jnp.float32) * 0.05
    gamma = 1.0 + 0.1 * jax.random.normal(kg, (w_out,), jnp.float32)
    beta = 0.1 * jax.random.normal(kb, (w_out,), jnp.float32)
    running_mean = 0.1 * jax.random.normal(km, (w_out,), jnp.float32)
    running_var = 1.0 + 0.1 * jax.random.uniform(kv, (w_out,), jnp.float32)

    fwd = jax.jit(res_stem_cifar)
    out = jax.block_until_ready(fwd(x, weight, gamma, beta,
                                    running_mean, running_var))

    # Reference on bf16-rounded inputs (the kernel feeds bf16 to the MXU with
    # f32 accumulation), so the comparison isolates accumulation-order noise.
    x_b = x.astype(jnp.bfloat16).astype(jnp.float32)
    w_b = weight.astype(jnp.bfloat16).astype(jnp.float32)
    ref = _reference(x_b, w_b, gamma, beta, running_mean, running_var)

    assert out.shape == (N, w_out, H, W), out.shape
    assert jnp.allclose(out, ref, rtol=1e-3, atol=1e-3), \
        float(jnp.max(jnp.abs(out - ref)))
    print("KERNEL_OK")
</pallas_src>

<mosaic_0001>
module attributes {stable_mosaic.version = 11 : i64} {
  func.func @_conv_bn_relu_kernel(%arg0: i32, %arg1: i32, %arg2: memref<1x256x27xbf16, #tpu.memory_space<vmem>>, %arg3: memref<27x128xbf16, #tpu.memory_space<vmem>>, %arg4: memref<1x128xf32, #tpu.memory_space<vmem>>, %arg5: memref<1x128xf32, #tpu.memory_space<vmem>>, %arg6: memref<1x256x128xf32, #tpu.memory_space<vmem>>) attributes {dimension_semantics = [#tpu.dimension_semantics<parallel>, #tpu.dimension_semantics<parallel>], iteration_bounds = array<i64: 2, 4>, scalar_prefetch = 0 : i64, scratch_operands = 0 : i64, tpu.core_type = #tpu.core_type<tc>, window_params = [{transform_indices = @transform_0, window_bounds = array<i64: 1, 256, 27>}, {pipeline_mode = #tpu.pipeline_mode<synchronous>, transform_indices = @transform_1, window_bounds = array<i64: 27, 128>}, {pipeline_mode = #tpu.pipeline_mode<synchronous>, transform_indices = @transform_2, window_bounds = array<i64: 1, 128>}, {pipeline_mode = #tpu.pipeline_mode<synchronous>, transform_indices = @transform_3, window_bounds = array<i64: 1, 128>}, {transform_indices = @transform_4, window_bounds = array<i64: 1, 256, 128>}]} {
    %c0 = arith.constant 0 : index
    %c0_0 = arith.constant 0 : index
    %c0_1 = arith.constant 0 : index
    %0 = vector.load %arg2[%c0, %c0_0, %c0_1] : memref<1x256x27xbf16, #tpu.memory_space<vmem>>, vector<1x256x27xbf16>
    %1 = vector.shape_cast %0 : vector<1x256x27xbf16> to vector<256x27xbf16>
    %c0_2 = arith.constant 0 : index
    %c0_3 = arith.constant 0 : index
    %2 = vector.load %arg3[%c0_2, %c0_3] : memref<27x128xbf16, #tpu.memory_space<vmem>>, vector<27x128xbf16>
    %cst = arith.constant dense<0.000000e+00> : vector<256x128xf32>
    %3 = tpu.matmul %1, %2, %cst {dimension_numbers = #tpu.dot_dimension_numbers<[1], [0], [0], [1], [0, 0, 1, 1], [], []>} : vector<256x27xbf16>, vector<27x128xbf16>, vector<256x128xf32> -> vector<256x128xf32>
    %c0_4 = arith.constant 0 : index
    %c0_5 = arith.constant 0 : index
    %4 = vector.load %arg4[%c0_4, %c0_5] : memref<1x128xf32, #tpu.memory_space<vmem>>, vector<1x128xf32>
    %5 = vector.broadcast %4 : vector<1x128xf32> to vector<256x128xf32>
    %6 = arith.mulf %3, %5 : vector<256x128xf32>
    %c0_6 = arith.constant 0 : index
    %c0_7 = arith.constant 0 : index
    %7 = vector.load %arg5[%c0_6, %c0_7] : memref<1x128xf32, #tpu.memory_space<vmem>>, vector<1x128xf32>
    %8 = vector.broadcast %7 : vector<1x128xf32> to vector<256x128xf32>
    %9 = arith.addf %6, %8 : vector<256x128xf32>
    %cst_8 = arith.constant 0.000000e+00 : f32
    %10 = vector.broadcast %cst_8 : f32 to vector<256x128xf32>
    %11 = arith.maximumf %9, %10 : vector<256x128xf32>
    %c0_9 = arith.constant 0 : index
    %c0_10 = arith.constant 0 : index
    %c0_11 = arith.constant 0 : index
    %12 = vector.load %arg6[%c0_9, %c0_10, %c0_11] : memref<1x256x128xf32, #tpu.memory_space<vmem>>, vector<1x256x128xf32>
    %13 = vector.shape_cast %12 : vector<1x256x128xf32> to vector<256x128xf32>
    %14 = vector.shape_cast %11 : vector<256x128xf32> to vector<1x256x128xf32>
    tpu.vector_store %arg6[%c0_9, %c0_10, %c0_11], %14 {strides = array<i32>} : memref<1x256x128xf32, #tpu.memory_space<vmem>>, vector<1x256x128xf32>,
    return
  }
  func.func @transform_0(%arg0: i32, %arg1: i32) -> (i32, i32, i32) {
    %c0_i32 = arith.constant 0 : i32
    %c0_i32_0 = arith.constant 0 : i32
    return %arg0, %arg1, %c0_i32 : i32, i32, i32
  }
  func.func @transform_1(%arg0: i32, %arg1: i32) -> (i32, i32) {
    %c0_i32 = arith.constant 0 : i32
    %c0_i32_0 = arith.constant 0 : i32
    %c0_i32_1 = arith.constant 0 : i32
    return %c0_i32, %c0_i32_0 : i32, i32
  }
  func.func @transform_2(%arg0: i32, %arg1: i32) -> (i32, i32) {
    %c0_i32 = arith.constant 0 : i32
    %c0_i32_0 = arith.constant 0 : i32
    %c0_i32_1 = arith.constant 0 : i32
    return %c0_i32, %c0_i32_0 : i32, i32
  }
  func.func @transform_3(%arg0: i32, %arg1: i32) -> (i32, i32) {
    %c0_i32 = arith.constant 0 : i32
    %c0_i32_0 = arith.constant 0 : i32
    %c0_i32_1 = arith.constant 0 : i32
    return %c0_i32, %c0_i32_0 : i32, i32
  }
  func.func @transform_4(%arg0: i32, %arg1: i32) -> (i32, i32, i32) {
    %c0_i32 = arith.constant 0 : i32
    %c0_i32_0 = arith.constant 0 : i32
    return %arg0, %arg1, %c0_i32 : i32, i32, i32
  }
}

</mosaic_0001>

<bundles_post_ra>
// kernel: res_stem_cifar.1
= control target key start
LH: loop header
LB: loop body
LE: loop exit
PB: predicated region body
PF: predicated region fallthrough
CT: control target
= control target key end

     0   :  { %s1046_s15 = smov 0   ;;  %s1048_s16 = smov 0   ;;  %s1252_s0 = inlined_call_operand.vmem [shape: bf16[2,1024,27], index: 0, kind: input, shape index: {}]   ;;  %s1253_s1 = inlined_call_operand.vmem [shape: bf16[27,128], index: 1, kind: input, shape index: {}]   ;;  %s1254_s2 = inlined_call_operand.vmem [shape: f32[1,128], index: 2, kind: input, shape index: {}]   ;;  %s1255_s3 = inlined_call_operand.vmem [shape: f32[1,128], index: 3, kind: input, shape index: {}]   ;;  %s1256_s4 = inlined_call_operand.vmem [shape: f32[2,1024,128], index: 4, kind: output, shape index: {}]  }
   0x1   :  { %s1050_s17 = smov 0   ;;  %s1052_s18 = smov 0  }
   0x2   :  { %s1054_s19 = smov 0  }
   0x3 LB: > { %s23_s20 = sadd.s32 1, %s1010_s17  ;;  %s26_s21 = sadd.s32 1, %s1014_s18  ;;  %s1018_s19 = sphi %s1054_s19, %s14_s19   ;;  %s1014_s18 = sphi %s1052_s18, %s1260_s18   ;;  %s1010_s17 = sphi %s1050_s17, %s1259_s17   ;;  %s1006_s16 = sphi %s1048_s16, %s1258_s16   ;;  %s1002_s15 = sphi %s1046_s15, %s1257_s15  }
   0x4   : > { %p24_p0 = scmp.ge.s32.totalorder %s23_s20, 4  ;;  %p818_p1 = scmp.ge.s32.totalorder %s1018_s19, 1 }
   0x5   : > { %p183_p2 = scmp.lt.s32.totalorder %s1018_s19, 9 }
   0x6   : > { %s1262_s20 = smov (%p24_p0, %s23_s20), 0  ;;  %s1264_s21 = smov (!%p24_p0, %s26_s21), %s1014_s18 }
   0x7   : > { %p184_p3 = pnand %p818_p1, %p183_p2  ;;  %p28_p4 = scmp.ge.s32.totalorder %s1264_s21, 2 }
   0x8   : > { %v962_v0 = vld [vmem:[%s1253_s1] sm:$0xff] (!%p184_p3)   ;;  %vm414_vm0 = vcmask (!%p184_p3), 1044480   ;;  %v963_v1 = vld [vmem:[%s1253_s1 + $0x8] sm:$0x3f] (!%p184_p3)   ;;  %vm415_vm1 = vcmask (!%p184_p3), 1045504   ;;  %s819_s26 = sshll.u32 (!%p184_p3), %s1002_s15, 5 }
   0x9   : > { %s1266_s21 = smov (%p28_p4, %s1264_s21), 0  ;;  %187 = sbr.rel (%p184_p3) target bundleno = 270 (0x10e), region = 36 }
   0xa   : > { %881 = vmatprep.subr.bf16.mxu0 (!%p184_p3), %v962_v0  ;;  %917 = vmatprep.subr.bf16.mxu1 (!%p184_p3), %v962_v0  ;;  %p218_p5 = scmp.lt.s32.totalorder (!%p184_p3), %s1006_s16, 1  ;;  %v1020_v2 = vmov (!%p184_p3), 65535   ;;  %p220_p6 = scmp.lt.s32.totalorder (!%p184_p3), %s819_s26, 127  ;;  %vm365_vm2 = vcmask (!%p184_p3), 220160   ;;  %v1128_v22 = vld [vmem:[%s1254_s2] ss:$0 sm:$0xff] (!%p184_p3) }
   0xb   : > { %882 = vmatpush3.bf16.msra.mxu0 (!%p184_p3), %v962_v0  ;;  %919 = vmatpush3.bf16.msra.mxu1 (!%p184_p3), %v962_v0  ;;  %v416_v3 = vsel (!%p184_p3), %vm414_vm0, 4294967295, %v1020_v2  ;;  %v1133_v24 = vld [vmem:[%s1255_s3] ss:$0 sm:$0xff] (!%p184_p3) }
   0xc   : > { %v417_v4 = vsel (!%p184_p3), %vm415_vm1, %v416_v3, 0 }
   0xd   : > { %v419_v5 = vand.u32 (!%p184_p3), %v963_v1, %v417_v4 }
   0xf   : > { %883 = vmatprep.subr.bf16.mxu0 (!%p184_p3), %v419_v5  ;;  %918 = vmatprep.subr.bf16.mxu1 (!%p184_p3), %v419_v5 }
  0x10   : > { %s1268_s16 = smov (!%p218_p5, %s1006_s16), 1  ;;  %s1270_s26 = smov (!%p220_p6, %s819_s26), 127  ;;  %884 = vmatpush3.bf16.msra.mxu0 %v419_v5  ;;  %920 = vmatpush3.bf16.msra.mxu1 %v419_v5 }
  0x11   : > { %s820_s27 = sshll.u32 %s1268_s16, 7 }
  0x12   : > { %s1085_s28 = sadd.s32 %s820_s27, %s1270_s26 }
  0x13   : > { %s821_s29 = sshll.u32 %s1085_s28, 2  ;;  %s824_s11 = sshll.u32 %s1085_s28, 3 }
  0x14   : > { %s1091_s6 = scalar_lea.vmem %s1252_s0, %s821_s29  ;;  %s1145_s14 = scalar_lea.vmem %s1256_s4, %s824_s11 }
  0x15   : > { %v964_v6 = vld [vmem:[%s1091_s6] sm:$0xff]   ;;  %v966_v8 = vld [vmem:[%s1091_s6 + $0x8] sm:$0xff]   ;;  %v968_v10 = vld [vmem:[%s1091_s6 + $0x10] sm:$0xff]  }
  0x16   : > { %v965_v7 = vld [vmem:[%s1091_s6 + $0x40] sm:$0xff]   ;;  %885 = vmatprep.mubr.msk.bf16.mxu0 %vm365_vm2, %v964_v6  ;;  %v967_v9 = vld [vmem:[%s1091_s6 + $0x48] sm:$0xff]   ;;  %v969_v11 = vld [vmem:[%s1091_s6 + $0x50] sm:$0xff]  }
  0x17   : > { %901 = vmatprep.mubr.msk.bf16.mxu1 %vm365_vm2, %v965_v7  ;;  %886 = vmatmul.mubr.msk.bf16.vlgmr.msra.gmra.mrb[0].mxu0 %vm365_vm2, %v966_v8  ;;  %v970_v12 = vld [vmem:[%s1091_s6 + $0x18] sm:$0xff]   ;;  %v972_v14 = vld [vmem:[%s1091_s6 + $0x20] sm:$0xff]   ;;  %v974_v16 = vld [vmem:[%s1091_s6 + $0x28] sm:$0xff]  }
  0x18   : > { %902 = vmatmul.mubr.msk.bf16.vlgmr.msra.gmra.mrb[0].mxu1 %vm365_vm2, %v967_v9  ;;  %889 = vmatprep.mubr.msk.bf16.mxu0 %vm365_vm2, %v968_v10  ;;  %v971_v13 = vld [vmem:[%s1091_s6 + $0x58] sm:$0xff]   ;;  %v973_v15 = vld [vmem:[%s1091_s6 + $0x60] sm:$0xff]   ;;  %v975_v17 = vld [vmem:[%s1091_s6 + $0x68] sm:$0xff]  }
  0x19   : > { %905 = vmatprep.mubr.msk.bf16.mxu1 %vm365_vm2, %v969_v11  ;;  %v976_v18 = vld [vmem:[%s1091_s6 + $0x30] sm:$0xff]   ;;  %v978_v20 = vld [vmem:[%s1091_s6 + $0x38] sm:$0xff]  }
  0x1a   : > { %v977_v19 = vld [vmem:[%s1091_s6 + $0x70] sm:$0xff]   ;;  %v979_v21 = vld [vmem:[%s1091_s6 + $0x78] sm:$0xff]  }
  0x1f   : > { %890 = vmatmul.mubr.msk.bf16.gmra.mrb[4].mxu0 %vm365_vm2, %v970_v12 }
  0x20   : > { %906 = vmatmul.mubr.msk.bf16.gmra.mrb[4].mxu1 %vm365_vm2, %v971_v13  ;;  %893 = vmatprep.mubr.msk.bf16.mxu0 %vm365_vm2, %v972_v14 }
  0x21   : > { %909 = vmatprep.mubr.msk.bf16.mxu1 %vm365_vm2, %v973_v15 }
  0x27   : > { %894 = vmatmul.mubr.msk.bf16.gmra.mrb[8].mxu0 %vm365_vm2, %v974_v16 }
  0x28   : > { %910 = vmatmul.mubr.msk.bf16.gmra.mrb[8].mxu1 %vm365_vm2, %v975_v17  ;;  %897 = vmatprep.mubr.msk.bf16.mxu0 %vm365_vm2, %v976_v18 }
  0x29   : > { %913 = vmatprep.mubr.msk.bf16.mxu1 %vm365_vm2, %v977_v19 }
  0x2f   : > { %898 = vmatmul.mubr.msk.bf16.gmra.mrb[12].mxu0 %vm365_vm2, %v978_v20 }
  0x30   : > { %914 = vmatmul.mubr.msk.bf16.gmra.mrb[12].mxu1 %vm365_vm2, %v979_v21 }
  0xea   : > { %v887_v23 = vpop.f32.mrb[0].mxu0 }
  0xeb   : > { %v591_v25 = vmul.f32 %v887_v23, %v1128_v22  ;;  %v903_v26 = vpop.f32.mrb[0].mxu1  ;;  %v455_v27 = vpop.f32.mrb[1].mxu0 }
  0xec   : > { %v607_v28 = vmul.f32 %v903_v26, %v1128_v22  ;;  %v589_v29 = vmul.f32 %v1128_v22, %v455_v27  ;;  %v519_v30 = vpop.f32.mrb[1].mxu1  ;;  %v888_v31 = vpop.f32.mrb[2].mxu0 }
  0xed   : > { %v630_v32 = vadd.f32 %v1133_v24, %v591_v25  ;;  %v605_v33 = vmul.f32 %v1128_v22, %v519_v30  ;;  %v592_v34 = vmul.f32 %v888_v31, %v1128_v22  ;;  %v904_v35 = vpop.f32.mrb[2].mxu1  ;;  %v458_v36 = vpop.f32.mrb[3].mxu0 }
  0xee   : > { %v646_v37 = vadd.f32 %v1133_v24, %v607_v28  ;;  %v628_v38 = vadd.f32 %v1133_v24, %v589_v29  ;;  %v608_v39 = vmul.f32 %v904_v35, %v1128_v22  ;;  %v590_v40 = vmul.f32 %v1128_v22, %v458_v36  ;;  %v522_v41 = vpop.f32.mrb[3].mxu1 }
  0xef   : > { %v662_v42 = vmax.f32 %v630_v32, 0.0  ;;  %v644_v43 = vadd.f32 %v1133_v24, %v605_v33  ;;  %v631_v44 = vadd.f32 %v1133_v24, %v592_v34  ;;  %v606_v45 = vmul.f32 %v1128_v22, %v522_v41 }
  0xf0   : > { %v678_v46 = vmax.f32 %v646_v37, 0.0  ;;  %v660_v47 = vmax.f32 %v628_v38, 0.0  ;;  %v647_v48 = vadd.f32 %v1133_v24, %v608_v39  ;;  %v629_v49 = vadd.f32 %v1133_v24, %v590_v40 }
  0xf1   : > { %694 = vst [vmem:[%s1145_s14 + $0x10] sm:$0xff] %v662_v42  ;;  %v676_v50 = vmax.f32 %v644_v43, 0.0  ;;  %v663_v51 = vmax.f32 %v631_v44, 0.0  ;;  %v645_v52 = vadd.f32 %v1133_v24, %v606_v45 }
  0xf2   : > { %710 = vst [vmem:[%s1145_s14 + $0x90] sm:$0xff] %v678_v46  ;;  %692 = vst [vmem:[%s1145_s14] sm:$0xff] %v660_v47  ;;  %v679_v53 = vmax.f32 %v647_v48, 0.0  ;;  %v661_v54 = vmax.f32 %v629_v49, 0.0  ;;  %v891_v55 = vpop.f32.mrb[4].mxu0 }
  0xf3   : > { %708 = vst [vmem:[%s1145_s14 + $0x80] sm:$0xff] %v676_v50  ;;  %695 = vst [vmem:[%s1145_s14 + $0x18] sm:$0xff] %v663_v51  ;;  %v677_v56 = vmax.f32 %v645_v52, 0.0  ;;  %v595_v57 = vmul.f32 %v891_v55, %v1128_v22  ;;  %v907_v58 = vpop.f32.mrb[4].mxu1  ;;  %v471_v59 = vpop.f32.mrb[5].mxu0 }
  0xf4   : > { %711 = vst [vmem:[%s1145_s14 + $0x98] sm:$0xff] %v679_v53  ;;  %693 = vst [vmem:[%s1145_s14 + $0x8] sm:$0xff] %v661_v54  ;;  %v611_v60 = vmul.f32 %v907_v58, %v1128_v22  ;;  %v593_v61 = vmul.f32 %v1128_v22, %v471_v59  ;;  %v535_v62 = vpop.f32.mrb[5].mxu1  ;;  %v892_v63 = vpop.f32.mrb[6].mxu0 }
  0xf5   : > { %709 = vst [vmem:[%s1145_s14 + $0x88] sm:$0xff] %v677_v56  ;;  %v634_v0 = vadd.f32 %v1133_v24, %v595_v57  ;;  %v609_v1 = vmul.f32 %v1128_v22, %v535_v62  ;;  %v596_v2 = vmul.f32 %v892_v63, %v1128_v22  ;;  %v908_v3 = vpop.f32.mrb[6].mxu1  ;;  %v474_v4 = vpop.f32.mrb[7].mxu0 }
  0xf6   : > { %v650_v5 = vadd.f32 %v1133_v24, %v611_v60  ;;  %v632_v6 = vadd.f32 %v1133_v24, %v593_v61  ;;  %v612_v7 = vmul.f32 %v908_v3, %v1128_v22  ;;  %v594_v8 = vmul.f32 %v1128_v22, %v474_v4  ;;  %v538_v9 = vpop.f32.mrb[7].mxu1 }
  0xf7   : > { %v666_v10 = vmax.f32 %v634_v0, 0.0  ;;  %v648_v11 = vadd.f32 %v1133_v24, %v609_v1  ;;  %v635_v12 = vadd.f32 %v1133_v24, %v596_v2  ;;  %v610_v13 = vmul.f32 %v1128_v22, %v538_v9 }
  0xf8   : > { %v682_v14 = vmax.f32 %v650_v5, 0.0  ;;  %v664_v15 = vmax.f32 %v632_v6, 0.0  ;;  %v651_v16 = vadd.f32 %v1133_v24, %v612_v7  ;;  %v633_v17 = vadd.f32 %v1133_v24, %v594_v8 }
  0xf9   : > { %698 = vst [vmem:[%s1145_s14 + $0x30] sm:$0xff] %v666_v10  ;;  %v680_v18 = vmax.f32 %v648_v11, 0.0  ;;  %v667_v19 = vmax.f32 %v635_v12, 0.0  ;;  %v649_v20 = vadd.f32 %v1133_v24, %v610_v13 }
  0xfa   : > { %714 = vst [vmem:[%s1145_s14 + $0xb0] sm:$0xff] %v682_v14  ;;  %696 = vst [vmem:[%s1145_s14 + $0x20] sm:$0xff] %v664_v15  ;;  %v683_v21 = vmax.f32 %v651_v16, 0.0  ;;  %v665_v23 = vmax.f32 %v633_v17, 0.0  ;;  %v895_v25 = vpop.f32.mrb[8].mxu0 }
  0xfb   : > { %712 = vst [vmem:[%s1145_s14 + $0xa0] sm:$0xff] %v680_v18  ;;  %699 = vst [vmem:[%s1145_s14 + $0x38] sm:$0xff] %v667_v19  ;;  %v681_v26 = vmax.f32 %v649_v20, 0.0  ;;  %v599_v27 = vmul.f32 %v895_v25, %v1128_v22  ;;  %v911_v28 = vpop.f32.mrb[8].mxu1  ;;  %v487_v29 = vpop.f32.mrb[9].mxu0 }
  0xfc   : > { %715 = vst [vmem:[%s1145_s14 + $0xb8] sm:$0xff] %v683_v21  ;;  %697 = vst [vmem:[%s1145_s14 + $0x28] sm:$0xff] %v665_v23  ;;  %v615_v30 = vmul.f32 %v911_v28, %v1128_v22  ;;  %v597_v31 = vmul.f32 %v1128_v22, %v487_v29  ;;  %v551_v32 = vpop.f32.mrb[9].mxu1  ;;  %v896_v33 = vpop.f32.mrb[10].mxu0 }
  0xfd   : > { %713 = vst [vmem:[%s1145_s14 + $0xa8] sm:$0xff] %v681_v26  ;;  %v638_v34 = vadd.f32 %v1133_v24, %v599_v27  ;;  %v613_v35 = vmul.f32 %v1128_v22, %v551_v32  ;;  %v600_v36 = vmul.f32 %v896_v33, %v1128_v22  ;;  %v912_v37 = vpop.f32.mrb[10].mxu1  ;;  %v490_v38 = vpop.f32.mrb[11].mxu0 }
  0xfe   : > { %v654_v39 = vadd.f32 %v1133_v24, %v615_v30  ;;  %v636_v40 = vadd.f32 %v1133_v24, %v597_v31  ;;  %v616_v41 = vmul.f32 %v912_v37, %v1128_v22  ;;  %v598_v42 = vmul.f32 %v1128_v22, %v490_v38  ;;  %v554_v43 = vpop.f32.mrb[11].mxu1 }
  0xff   : > { %v670_v44 = vmax.f32 %v638_v34, 0.0  ;;  %v652_v45 = vadd.f32 %v1133_v24, %v613_v35  ;;  %v639_v46 = vadd.f32 %v1133_v24, %v600_v36  ;;  %v614_v47 = vmul.f32 %v1128_v22, %v554_v43 }
 0x100   : > { %v686_v48 = vmax.f32 %v654_v39, 0.0  ;;  %v668_v49 = vmax.f32 %v636_v40, 0.0  ;;  %v655_v50 = vadd.f32 %v1133_v24, %v616_v41  ;;  %v637_v51 = vadd.f32 %v1133_v24, %v598_v42 }
 0x101   : > { %702 = vst [vmem:[%s1145_s14 + $0x50] sm:$0xff] %v670_v44  ;;  %v684_v52 = vmax.f32 %v652_v45, 0.0  ;;  %v671_v53 = vmax.f32 %v639_v46, 0.0  ;;  %v653_v54 = vadd.f32 %v1133_v24, %v614_v47 }
 0x102   : > { %718 = vst [vmem:[%s1145_s14 + $0xd0] sm:$0xff] %v686_v48  ;;  %700 = vst [vmem:[%s1145_s14 + $0x40] sm:$0xff] %v668_v49  ;;  %v687_v55 = vmax.f32 %v655_v50, 0.0  ;;  %v669_v56 = vmax.f32 %v637_v51, 0.0  ;;  %v899_v57 = vpop.f32.mrb[12].mxu0 }
 0x103   : > { %716 = vst [vmem:[%s1145_s14 + $0xc0] sm:$0xff] %v684_v52  ;;  %703 = vst [vmem:[%s1145_s14 + $0x58] sm:$0xff] %v671_v53  ;;  %v685_v58 = vmax.f32 %v653_v54, 0.0  ;;  %v603_v59 = vmul.f32 %v899_v57, %v1128_v22  ;;  %v915_v60 = vpop.f32.mrb[12].mxu1  ;;  %v503_v61 = vpop.f32.mrb[13].mxu0 }
 0x104   : > { %719 = vst [vmem:[%s1145_s14 + $0xd8] sm:$0xff] %v687_v55  ;;  %701 = vst [vmem:[%s1145_s14 + $0x48] sm:$0xff] %v669_v56  ;;  %v619_v62 = vmul.f32 %v915_v60, %v1128_v22  ;;  %v601_v63 = vmul.f32 %v1128_v22, %v503_v61  ;;  %v567_v0 = vpop.f32.mrb[13].mxu1  ;;  %v900_v1 = vpop.f32.mrb[14].mxu0 }
 0x105   : > { %717 = vst [vmem:[%s1145_s14 + $0xc8] sm:$0xff] %v685_v58  ;;  %v642_v2 = vadd.f32 %v1133_v24, %v603_v59  ;;  %v617_v3 = vmul.f32 %v1128_v22, %v567_v0  ;;  %v604_v4 = vmul.f32 %v900_v1, %v1128_v22  ;;  %v916_v5 = vpop.f32.mrb[14].mxu1  ;;  %v506_v6 = vpop.f32.mrb[15].mxu0 }
 0x106   : > { %v658_v7 = vadd.f32 %v1133_v24, %v619_v62  ;;  %v640_v8 = vadd.f32 %v1133_v24, %v601_v63  ;;  %v620_v9 = vmul.f32 %v916_v5, %v1128_v22  ;;  %v602_v10 = vmul.f32 %v1128_v22, %v506_v6  ;;  %v570_v11 = vpop.f32.mrb[15].mxu1 }
 0x107   : > { %v674_v12 = vmax.f32 %v642_v2, 0.0  ;;  %v656_v13 = vadd.f32 %v1133_v24, %v617_v3  ;;  %v643_v14 = vadd.f32 %v1133_v24, %v604_v4  ;;  %v618_v15 = vmul.f32 %v1128_v22, %v570_v11 }
 0x108   : > { %v690_v16 = vmax.f32 %v658_v7, 0.0  ;;  %v672_v17 = vmax.f32 %v640_v8, 0.0  ;;  %v659_v18 = vadd.f32 %v1133_v24, %v620_v9  ;;  %v641_v19 = vadd.f32 %v1133_v24, %v602_v10 }
 0x109   : > { %706 = vst [vmem:[%s1145_s14 + $0x70] sm:$0xff] %v674_v12  ;;  %v688_v20 = vmax.f32 %v656_v13, 0.0  ;;  %v675_v21 = vmax.f32 %v643_v14, 0.0  ;;  %v657_v23 = vadd.f32 %v1133_v24, %v618_v15 }
 0x10a   : > { %722 = vst [vmem:[%s1145_s14 + $0xf0] sm:$0xff] %v690_v16  ;;  %704 = vst [vmem:[%s1145_s14 + $0x60] sm:$0xff] %v672_v17  ;;  %v691_v25 = vmax.f32 %v659_v18, 0.0  ;;  %v673_v26 = vmax.f32 %v641_v19, 0.0 }
 0x10b   : > { %720 = vst [vmem:[%s1145_s14 + $0xe0] sm:$0xff] %v688_v20  ;;  %707 = vst [vmem:[%s1145_s14 + $0x78] sm:$0xff] %v675_v21  ;;  %v689_v22 = vmax.f32 %v657_v23, 0.0 }
 0x10c   : > { %723 = vst [vmem:[%s1145_s14 + $0xf8] sm:$0xff] %v691_v25  ;;  %705 = vst [vmem:[%s1145_s14 + $0x68] sm:$0xff] %v673_v26 }
 0x10d   : > { %721 = vst [vmem:[%s1145_s14 + $0xe8] sm:$0xff] %v689_v22 }
 0x10e PF: > { %s14_s19 = sadd.s32 1, %s1018_s19   ;;  %s1257_s15 = smov %s1010_s17 }
 0x10f   : > { %p11_p7 = scmp.ge.s32.totalorder %s14_s19, 10   ;;  %s1258_s16 = smov %s1014_s18 }
 0x110   : > { %s1259_s17 = smov %s1262_s20  ;;  %s1260_s18 = smov %s1266_s21 }
 0x111   :  { %13 = sbr.rel (!%p11_p7) target bundleno = 3 (0x3), region = 66 }

</bundles_post_ra>
